<compile_context>
chip_gen: v7x
topology: tpu7x:2x2x1
jax: 0.10.0
libtpu: 0.0.40
codegen_flags: <defaults>
</compile_context>

<pallas_src>
import functools

import jax
import jax.numpy as jnp
from jax.experimental import pallas as pl
from jax.experimental.pallas import tpu as pltpu


def _roundup(n, m):
    return ((n + m - 1) // m) * m


def _cnn_kernel(x_ref, w_ref, b_ref, out_ref, *, K1, N1, N2, H, O,
                r1e, r1o, r2, r3, r4):
    """Whole forward for one batch-row tile: 5 MXU matmuls + VPU max/bias/ReLU.

    x_ref : (bt, K1)  bf16  flattened input rows (K1 = L*C_in)
    w_ref : (R, LW)   bf16  fused weight slab: conv1-even | conv1-odd | conv2+flatten | fc1 | fc2
    b_ref : (4, LW)   f32   bias slab: tiled conv1 bias | tiled conv2 bias | fc1 | fc2
    out   : (bt, O)   f32
    """
    x = x_ref[...]

    # conv1 split into even / odd output time steps (both taps folded into K) ...
    ye = jnp.dot(x, w_ref[r1e:r1e + K1, :N1], preferred_element_type=jnp.float32)
    yo = jnp.dot(x, w_ref[r1o:r1o + K1, :N1], preferred_element_type=jnp.float32)
    # ... so MaxPool1d(k=2) is a plain VPU max of the two results, then bias + ReLU.
    p = jnp.maximum(jnp.maximum(ye, yo) + b_ref[0:1, :N1], 0.0)          # (bt, Lp*C1)

    # conv2 + torch flatten fused into one block-banded matmul (columns already in
    # channel-major flatten order), bias + ReLU.
    z = jnp.dot(p.astype(jnp.bfloat16), w_ref[r2:r2 + N1, :N2],
                preferred_element_type=jnp.float32)
    z = jnp.maximum(z + b_ref[1:2, :N2], 0.0)                            # (bt, Lf*C2)

    # fc1 + ReLU
    h = jnp.dot(z.astype(jnp.bfloat16), w_ref[r3:r3 + N2, :H],
                preferred_element_type=jnp.float32)
    h = jnp.maximum(h + b_ref[2:3, :H], 0.0)                             # (bt, H)

    # fc2
    o = jnp.dot(h.astype(jnp.bfloat16), w_ref[r4:r4 + H, :O],
                preferred_element_type=jnp.float32)
    out_ref[...] = o + b_ref[3:4, :O]                                    # single (bt, O) store


@jax.jit
def cnn_forward(x_blc, params):
    """x_blc: (B, L, C_in) -- same layout the PyTorch module receives."""
    w1, b1, w2, b2, wf1, bf1, wf2, bf2 = params
    B, L, Cin = x_blc.shape
    C1 = w1.shape[0]
    C2 = w2.shape[0]
    H, F = wf1.shape
    O = wf2.shape[0]
    Lc1 = L - 1                # conv1 output length (k=2, stride 1)
    Lp = Lc1 // 2              # after MaxPool1d(k=2)
    Lf = Lp - 1                # conv2 output length
    # PyTorch sizes fc1 with (L-2)//2 - 1; identical to Lf for even L.
    assert F == C2 * Lf, "requires even input length (matches the PyTorch fc1 sizing)"

    K1 = L * Cin               # contraction dim of conv1-as-matmul
    N1 = Lp * C1               # pooled conv1 features (time blocks on lanes)
    N2 = Lf * C2               # conv2 features == torch flatten width
    LW = max(N1, N2, H, O)     # lane width of the parameter slabs

    # --------- wrapper-side layout plumbing (weights only; would be cached per-params) -----
    w1T = jnp.transpose(w1, (1, 0, 2))   # (Cin, C1, 2):  w1T[i, c, k] = w1[c, i, k]
    w2T = jnp.transpose(w2, (1, 0, 2))   # (C1, C2, 2):   w2T[c1, c2, k] = w2[c2, c1, k]

    def conv1_mat(phase):
        # W[(t+k)*Cin + i, j*C1 + c] = w1[c, i, k]   with t = 2j + phase
        W = jnp.zeros((K1, N1), jnp.float32)
        for j in range(Lp):
            t = 2 * j + phase
            for k in range(2):
                W = W.at[(t + k) * Cin:(t + k + 1) * Cin,
                         j * C1:(j + 1) * C1].set(w1T[:, :, k])
        return W

    W1e = conv1_mat(0)
    W1o = conv1_mat(1)

    # conv2 + flatten: W[(f+k)*C1 + c1, c2*Lf + f] = w2[c2, c1, k]
    W2 = jnp.zeros((N1, N2), jnp.float32)
    for f in range(Lf):
        for k in range(2):
            W2 = W2.at[(f + k) * C1:(f + k + 1) * C1, f::Lf].set(w2T[:, :, k])

    # Pack everything into one bf16 slab; 16-row-aligned offsets -> relayout-free slices.
    r1e = 0
    r1o = r1e + _roundup(K1, 16)
    r2 = r1o + _roundup(K1, 16)
    r3 = r2 + _roundup(N1, 16)
    r4 = r3 + _roundup(N2, 16)
    R = r4 + _roundup(H, 16)

    w_slab = jnp.zeros((R, LW), jnp.float32)
    w_slab = w_slab.at[r1e:r1e + K1, :N1].set(W1e)
    w_slab = w_slab.at[r1o:r1o + K1, :N1].set(W1o)
    w_slab = w_slab.at[r2:r2 + N1, :N2].set(W2)
    w_slab = w_slab.at[r3:r3 + N2, :H].set(wf1.T)
    w_slab = w_slab.at[r4:r4 + H, :O].set(wf2.T)
    w_slab = w_slab.astype(jnp.bfloat16)

    b_slab = jnp.zeros((4, LW), jnp.float32)
    b_slab = b_slab.at[0, :N1].set(jnp.tile(b1, Lp))     # per-channel conv1 bias, tiled over time
    b_slab = b_slab.at[1, :N2].set(jnp.repeat(b2, Lf))   # torch flatten order: c*Lf + f
    b_slab = b_slab.at[2, :H].set(bf1)
    b_slab = b_slab.at[3, :O].set(bf2)

    x_flat = x_blc.reshape(B, K1).astype(jnp.bfloat16)   # natural flatten, passed once

    # Batch-row grid: one tile for small B, 8-aligned row tiles (megacore-parallel) otherwise.
    bt = B
    for cand in (1024, 512, 256, 128):
        if B > cand and B % cand == 0:
            bt = cand
            break
    grid = (B // bt,)

    kernel = functools.partial(_cnn_kernel, K1=K1, N1=N1, N2=N2, H=H, O=O,
                               r1e=r1e, r1o=r1o, r2=r2, r3=r3, r4=r4)

    return pl.pallas_call(
        kernel,
        out_shape=jax.ShapeDtypeStruct((B, O), jnp.float32),
        grid=grid,
        in_specs=[
            pl.BlockSpec((bt, K1), lambda i: (i, 0)),     # activation row tile
            pl.BlockSpec((R, LW), lambda i: (0, 0)),      # weight slab: VMEM-resident
            pl.BlockSpec((4, LW), lambda i: (0, 0)),      # bias slab:   VMEM-resident
        ],
        out_specs=pl.BlockSpec((bt, O), lambda i: (i, 0)),
        compiler_params=pltpu.CompilerParams(dimension_semantics=("parallel",)),
    )(x_flat, w_slab, b_slab)


def cnn_forward_ref(x_blc, params):
    """Pure-JAX reference of the PyTorch forward with the kernel's numerics policy
    (bf16 weights/activations, f32 accumulation, f32 biases)."""
    w1, b1, w2, b2, wf1, bf1, wf2, bf2 = params
    bf = jnp.bfloat16
    x = jnp.transpose(x_blc, (0, 2, 1)).astype(bf)        # (B, C_in, L), NCW like torch
    w1b, w2b, wf1b, wf2b = (w.astype(bf) for w in (w1, w2, wf1, wf2))
    B, _, L = x.shape
    y = (jnp.einsum('oc,bcl->bol', w1b[:, :, 0], x[:, :, :L - 1],
                    preferred_element_type=jnp.float32)
         + jnp.einsum('oc,bcl->bol', w1b[:, :, 1], x[:, :, 1:],
                      preferred_element_type=jnp.float32)
         + b1[None, :, None])
    y = jax.nn.relu(y)
    Lp = (L - 1) // 2
    y = y[:, :, :2 * Lp].reshape(B, y.shape[1], Lp, 2).max(-1)
    yb = y.astype(bf)
    z = (jnp.einsum('oc,bcl->bol', w2b[:, :, 0], yb[:, :, :Lp - 1],
                    preferred_element_type=jnp.float32)
         + jnp.einsum('oc,bcl->bol', w2b[:, :, 1], yb[:, :, 1:],
                      preferred_element_type=jnp.float32)
         + b2[None, :, None])
    z = jax.nn.relu(z)
    flat = z.reshape(B, -1).astype(bf)
    h = jax.nn.relu(jnp.dot(flat, wf1b.T, preferred_element_type=jnp.float32) + bf1)
    return jnp.dot(h.astype(bf), wf2b.T, preferred_element_type=jnp.float32) + bf2


def init_params(key, input_size, output_size, c1, c2, fc1_units):
    Cin, L = input_size
    F = c2 * ((L - 2) // 2 - 1)          # matches the PyTorch module's fc1 sizing
    ks = jax.random.split(key, 8)

    def u(k, shape, fan_in):
        bound = 1.0 / jnp.sqrt(fan_in)
        return jax.random.uniform(k, shape, jnp.float32, -bound, bound)

    w1 = u(ks[0], (c1, Cin, 2), Cin * 2)
    b1 = u(ks[1], (c1,), Cin * 2)
    w2 = u(ks[2], (c2, c1, 2), c1 * 2)
    b2 = u(ks[3], (c2,), c1 * 2)
    wf1 = u(ks[4], (fc1_units, F), F)
    bf1 = u(ks[5], (fc1_units,), F)
    wf2 = u(ks[6], (output_size, fc1_units), fc1_units)
    bf2 = u(ks[7], (output_size,), fc1_units)
    return (w1, b1, w2, b2, wf1, bf1, wf2, bf2)


if __name__ == "__main__":
    # small shapes: batch=2, in_channels=4, seq_len=16, conv1=8, conv2=8, fc1=32, out=5
    B = 2
    input_size = (4, 16)        # (channels, length)
    output_size = 5
    conv1_out, conv2_out, fc1_units = 8, 8, 32

    key = jax.random.PRNGKey(0)
    k_x, k_p = jax.random.split(key)
    params = init_params(k_p, input_size, output_size, conv1_out, conv2_out, fc1_units)

    # module input is (B, L, C_in) -- it permutes internally to NCW
    x = jax.random.normal(k_x, (B, input_size[1], input_size[0]), jnp.float32)

    out = jax.block_until_ready(cnn_forward(x, params))
    ref = jax.block_until_ready(cnn_forward_ref(x, params))

    assert out.shape == (B, output_size), out.shape
    assert jnp.allclose(out, ref, atol=2e-3, rtol=2e-3), (out, ref)
    print("KERNEL_OK")
</pallas_src>

<mosaic_0001>
module attributes {stable_mosaic.version = 11 : i64} {
  func.func @_cnn_kernel(%arg0: i32, %arg1: memref<2x64xbf16, #tpu.memory_space<vmem>>, %arg2: memref<272x56xbf16, #tpu.memory_space<vmem>>, %arg3: memref<4x56xf32, #tpu.memory_space<vmem>>, %arg4: memref<2x5xf32, #tpu.memory_space<vmem>>) attributes {dimension_semantics = [#tpu.dimension_semantics<parallel>], iteration_bounds = array<i64: 1>, scalar_prefetch = 0 : i64, scratch_operands = 0 : i64, tpu.core_type = #tpu.core_type<tc>, window_params = [{transform_indices = @transform_0, window_bounds = array<i64: 2, 64>}, {pipeline_mode = #tpu.pipeline_mode<synchronous>, transform_indices = @transform_1, window_bounds = array<i64: 272, 56>}, {pipeline_mode = #tpu.pipeline_mode<synchronous>, transform_indices = @transform_2, window_bounds = array<i64: 4, 56>}, {transform_indices = @transform_3, window_bounds = array<i64: 2, 5>}]} {
    %c0 = arith.constant 0 : index
    %c0_0 = arith.constant 0 : index
    %0 = vector.load %arg1[%c0, %c0_0] : memref<2x64xbf16, #tpu.memory_space<vmem>>, vector<2x64xbf16>
    %c0_1 = arith.constant 0 : index
    %c0_2 = arith.constant 0 : index
    %1 = vector.load %arg2[%c0_1, %c0_2] : memref<272x56xbf16, #tpu.memory_space<vmem>>, vector<64x56xbf16>
    %cst = arith.constant dense<0.000000e+00> : vector<2x56xf32>
    %2 = tpu.matmul %0, %1, %cst {dimension_numbers = #tpu.dot_dimension_numbers<[1], [0], [0], [1], [0, 0, 1, 1], [], []>} : vector<2x64xbf16>, vector<64x56xbf16>, vector<2x56xf32> -> vector<2x56xf32>
    %c64 = arith.constant 64 : index
    %c0_3 = arith.constant 0 : index
    %3 = vector.load %arg2[%c64, %c0_3] : memref<272x56xbf16, #tpu.memory_space<vmem>>, vector<64x56xbf16>
    %cst_4 = arith.constant dense<0.000000e+00> : vector<2x56xf32>
    %4 = tpu.matmul %0, %3, %cst_4 {dimension_numbers = #tpu.dot_dimension_numbers<[1], [0], [0], [1], [0, 0, 1, 1], [], []>} : vector<2x64xbf16>, vector<64x56xbf16>, vector<2x56xf32> -> vector<2x56xf32>
    %5 = arith.maximumf %2, %4 : vector<2x56xf32>
    %c0_5 = arith.constant 0 : index
    %c0_6 = arith.constant 0 : index
    %6 = vector.load %arg3[%c0_5, %c0_6] : memref<4x56xf32, #tpu.memory_space<vmem>>, vector<1x56xf32>
    %7 = vector.broadcast %6 : vector<1x56xf32> to vector<2x56xf32>
    %8 = arith.addf %5, %7 : vector<2x56xf32>
    %cst_7 = arith.constant 0.000000e+00 : f32
    %9 = vector.broadcast %cst_7 : f32 to vector<2x56xf32>
    %10 = arith.maximumf %8, %9 : vector<2x56xf32>
    %11 = arith.truncf %10 : vector<2x56xf32> to vector<2x56xbf16>
    %c128 = arith.constant 128 : index
    %c0_8 = arith.constant 0 : index
    %12 = vector.load %arg2[%c128, %c0_8] : memref<272x56xbf16, #tpu.memory_space<vmem>>, vector<56x48xbf16>
    %cst_9 = arith.constant dense<0.000000e+00> : vector<2x48xf32>
    %13 = tpu.matmul %11, %12, %cst_9 {dimension_numbers = #tpu.dot_dimension_numbers<[1], [0], [0], [1], [0, 0, 1, 1], [], []>} : vector<2x56xbf16>, vector<56x48xbf16>, vector<2x48xf32> -> vector<2x48xf32>
    %c1 = arith.constant 1 : index
    %c0_10 = arith.constant 0 : index
    %14 = vector.load %arg3[%c1, %c0_10] : memref<4x56xf32, #tpu.memory_space<vmem>>, vector<1x48xf32>
    %15 = vector.broadcast %14 : vector<1x48xf32> to vector<2x48xf32>
    %16 = arith.addf %13, %15 : vector<2x48xf32>
    %cst_11 = arith.constant 0.000000e+00 : f32
    %17 = vector.broadcast %cst_11 : f32 to vector<2x48xf32>
    %18 = arith.maximumf %16, %17 : vector<2x48xf32>
    %19 = arith.truncf %18 : vector<2x48xf32> to vector<2x48xbf16>
    %c192 = arith.constant 192 : index
    %c0_12 = arith.constant 0 : index
    %20 = vector.load %arg2[%c192, %c0_12] : memref<272x56xbf16, #tpu.memory_space<vmem>>, vector<48x32xbf16>
    %cst_13 = arith.constant dense<0.000000e+00> : vector<2x32xf32>
    %21 = tpu.matmul %19, %20, %cst_13 {dimension_numbers = #tpu.dot_dimension_numbers<[1], [0], [0], [1], [0, 0, 1, 1], [], []>} : vector<2x48xbf16>, vector<48x32xbf16>, vector<2x32xf32> -> vector<2x32xf32>
    %c2 = arith.constant 2 : index
    %c0_14 = arith.constant 0 : index
    %22 = vector.load %arg3[%c2, %c0_14] : memref<4x56xf32, #tpu.memory_space<vmem>>, vector<1x32xf32>
    %23 = vector.broadcast %22 : vector<1x32xf32> to vector<2x32xf32>
    %24 = arith.addf %21, %23 : vector<2x32xf32>
    %cst_15 = arith.constant 0.000000e+00 : f32
    %25 = vector.broadcast %cst_15 : f32 to vector<2x32xf32>
    %26 = arith.maximumf %24, %25 : vector<2x32xf32>
    %27 = arith.truncf %26 : vector<2x32xf32> to vector<2x32xbf16>
    %c240 = arith.constant 240 : index
    %c0_16 = arith.constant 0 : index
    %28 = vector.load %arg2[%c240, %c0_16] : memref<272x56xbf16, #tpu.memory_space<vmem>>, vector<32x5xbf16>
    %cst_17 = arith.constant dense<0.000000e+00> : vector<2x5xf32>
    %29 = tpu.matmul %27, %28, %cst_17 {dimension_numbers = #tpu.dot_dimension_numbers<[1], [0], [0], [1], [0, 0, 1, 1], [], []>} : vector<2x32xbf16>, vector<32x5xbf16>, vector<2x5xf32> -> vector<2x5xf32>
    %c3 = arith.constant 3 : index
    %c0_18 = arith.constant 0 : index
    %30 = vector.load %arg3[%c3, %c0_18] : memref<4x56xf32, #tpu.memory_space<vmem>>, vector<1x5xf32>
    %31 = vector.broadcast %30 : vector<1x5xf32> to vector<2x5xf32>
    %32 = arith.addf %29, %31 : vector<2x5xf32>
    %c0_19 = arith.constant 0 : index
    %c0_20 = arith.constant 0 : index
    %33 = vector.load %arg4[%c0_19, %c0_20] : memref<2x5xf32, #tpu.memory_space<vmem>>, vector<2x5xf32>
    tpu.vector_store %arg4[%c0_19, %c0_20], %32 {strides = array<i32>} : memref<2x5xf32, #tpu.memory_space<vmem>>, vector<2x5xf32>,
    return
  }
  func.func @transform_0(%arg0: i32) -> (i32, i32) {
    %c0_i32 = arith.constant 0 : i32
    %c0_i32_0 = arith.constant 0 : i32
    return %arg0, %c0_i32 : i32, i32
  }
  func.func @transform_1(%arg0: i32) -> (i32, i32) {
    %c0_i32 = arith.constant 0 : i32
    %c0_i32_0 = arith.constant 0 : i32
    %c0_i32_1 = arith.constant 0 : i32
    return %c0_i32, %c0_i32_0 : i32, i32
  }
  func.func @transform_2(%arg0: i32) -> (i32, i32) {
    %c0_i32 = arith.constant 0 : i32
    %c0_i32_0 = arith.constant 0 : i32
    %c0_i32_1 = arith.constant 0 : i32
    return %c0_i32, %c0_i32_0 : i32, i32
  }
  func.func @transform_3(%arg0: i32) -> (i32, i32) {
    %c0_i32 = arith.constant 0 : i32
    %c0_i32_0 = arith.constant 0 : i32
    return %arg0, %c0_i32 : i32, i32
  }
}

</mosaic_0001>

<bundles_post_ra>
// kernel: tile.8
= control target key start
LH: loop header
LB: loop body
LE: loop exit
PB: predicated region body
PF: predicated region fallthrough
CT: control target
= control target key end

     0   :  { %s22_s0 = inlined_call_operand.vmem [shape: f32[8], index: 0, kind: input, shape index: {}]   ;;  %s23_s1 = inlined_call_operand.vmem [shape: f32[7,8], index: 1, kind: output, shape index: {}]  }
   0x1   :  { %v4_v0 = vld [vmem:[%s22_s0] ss:$0 sm:$0xff] }
   0x2   :  { %5 = vst [vmem:[%s23_s1] sm:$0xff] %v4_v0 }

// kernel: cnn_forward.1
= control target key start
LH: loop header
LB: loop body
LE: loop exit
PB: predicated region body
PF: predicated region fallthrough
CT: control target
= control target key end

     0   :  { %v559_v1 = vmov 0.0   ;;  %vm560_vm0 = vmmov 0   ;;  %vm49_vm1 = vcmask 523264   ;;  %s687_s0 = inlined_call_operand.vmem [shape: bf16[2,64], index: 0, kind: input, shape index: {}]   ;;  %s688_s1 = inlined_call_operand.vmem [shape: bf16[272,56], index: 1, kind: input, shape index: {}]   ;;  %s689_s2 = inlined_call_operand.vmem [shape: f32[4,56], index: 2, kind: input, shape index: {}]   ;;  %s690_s3 = inlined_call_operand.hbm [shape: f32[2,5], index: 3, kind: output, shape index: {}]  }
   0x1   :  { %v518_v0 = vld [vmem:[%s688_s1] sm:$0xff]   ;;  %461 = vmatprep.subr.bf16.mxu0 %v559_v1  ;;  %473 = vmatprep.subr.bf16.mxu1 %v559_v1  ;;  %v520_v3 = vld [vmem:[%s688_s1 + $0x8] sm:$0xff]   ;;  %v522_v5 = vld [vmem:[%s688_s1 + $0x10] sm:$0xff]  }
   0x2   :  { %v519_v2 = vld [vmem:[%s688_s1 + $0x20] sm:$0xff]   ;;  %462 = vmatpush3.bf16.msra.mxu0 %v518_v0  ;;  %469 = vmatprep.mubr.msk.bf16.mxu0 %vm560_vm0, %v559_v1  ;;  %v521_v4 = vld [vmem:[%s688_s1 + $0x28] sm:$0xff]   ;;  %v523_v6 = vld [vmem:[%s688_s1 + $0x30] sm:$0xff]  }
   0x3   :  { %474 = vmatpush3.bf16.msra.mxu1 %v519_v2  ;;  %463 = vmatprep.subr.bf16.mxu0 %v559_v1  ;;  %v524_v7 = vld [vmem:[%s688_s1 + $0x18] sm:$0xff]   ;;  %v16_v9 = vld [vmem:[%s687_s0] sm:$0x1] }
   0x4   :  { %475 = vmatprep.subr.bf16.mxu1 %v559_v1  ;;  %481 = vmatprep.mubr.msk.bf16.mxu1 %vm560_vm0, %v559_v1  ;;  %v525_v8 = vld [vmem:[%s688_s1 + $0x38] sm:$0xff]   ;;  %v526_v10 = vld [vmem:[%s688_s1 + $0x40] sm:$0xff]  }
   0x6   :  { %464 = vmatpush3.bf16.msra.mxu0 %v520_v3 }
   0x7   :  { %476 = vmatpush3.bf16.msra.mxu1 %v521_v4  ;;  %465 = vmatprep.subr.bf16.mxu0 %v559_v1 }
   0x8   :  { %477 = vmatprep.subr.bf16.mxu1 %v559_v1 }
   0xa   :  { %466 = vmatpush3.bf16.msra.mxu0 %v522_v5 }
   0xb   :  { %478 = vmatpush3.bf16.msra.mxu1 %v523_v6  ;;  %467 = vmatprep.subr.bf16.mxu0 %v559_v1 }
   0xc   :  { %479 = vmatprep.subr.bf16.mxu1 %v559_v1 }
   0xe   :  { %468 = vmatpush3.bf16.msra.mxu0 %v524_v7 }
   0xf   :  { %8 = vsyncpa [#allocation3], 0  ;;  %480 = vmatpush3.bf16.msra.mxu1 %v525_v8  ;;  %485 = vmatprep.subr.bf16.mxu0 %v559_v1  ;;  %v527_v11 = vld [vmem:[%s688_s1 + $0x48] sm:$0xff]   ;;  %v528_v12 = vld [vmem:[%s688_s1 + $0x50] sm:$0xff]   ;;  %vm211_vm2 = vcmask 1043456   ;;  %vm207_vm3 = vcmask 457728  }
  0x10   :  { %497 = vmatprep.subr.bf16.mxu1 %v559_v1  ;;  %v529_v13 = vld [vmem:[%s688_s1 + $0x58] ss:$0 sps:$4 sm:$0xff]   ;;  %v530_v15 = vld [vmem:[%s688_s1 + $0x60] sm:$0xff]   ;;  %v531_v29 = vld [vmem:[%s688_s1 + $0x68] sm:$0xff]   ;;  %vm286_vm4 = vcmask 392192   ;;  %vm353_vm5 = vcmask 261120  }
  0x11   :  { %470 = vmatmul.mubr.msk.bf16.vlgmr.msra.gmra.mrb[0].mxu0 %vm49_vm1, %v16_v9  ;;  %v213_v14 = vsel %vm211_vm2, %v529_v13, 0  ;;  %v423_v18 = vld [vmem:[%s689_s2] ss:$0 sm:$0xff]  ;;  %v532_v30 = vld [vmem:[%s688_s1 + $0x70] sm:$0xff]   ;;  %v424_v31 = vld [vmem:[%s689_s2 + $0x1] ss:$0 sm:$0xff] }
  0x12   :  { %482 = vmatmul.mubr.msk.bf16.vlgmr.msra.gmra.mrb[0].mxu1 %vm49_vm1, %v16_v9  ;;  %486 = vmatpush3.bf16.msra.mxu0 %v526_v10  ;;  %v533_v38 = vld [vmem:[%s688_s1 + $0x78] sm:$0xff]   ;;  %v534_v40 = vld [vmem:[%s688_s1 + $0x80] sm:$0xff]   ;;  %s561_s28 = smov [#allocation2]   ;;  %vm397_vm6 = vcmask 33792  }
  0x13   :  { %487 = vmatprep.subr.bf16.mxu0 %v559_v1  ;;  %493 = vmatprep.mubr.msk.bf16.mxu0 %vm560_vm0, %v559_v1  ;;  %v430_v41 = vld [vmem:[%s689_s2 + $0x2] ss:$0 sm:$0xff]  ;;  %v435_v49 = vld [vmem:[%s689_s2 + $0x3] ss:$0 sm:$0xff]  ;;  %s405_s1 = sshll.u32 %s561_s28, 4  ;;  %s406_s1 = int_to_ptr.vmem [resolvable:$true] %s405_s1 }
  0x14   :  { %503 = vmatprep.mubr.msk.bf16.mxu1 %vm560_vm0, %v559_v1  ;;  %498 = vmatpush3.bf16.msra.mxu1 %v530_v15  ;;  %s535_s29 = scalar_lea.vmem %s406_s1, 32  ;;  %p540_p1 = scmp.lt.s32.totalorder %s406_s1, %s406_s1 }
  0x15   :  { %499 = vmatprep.subr.bf16.mxu1 %v559_v1  ;;  %p536_p0 = scmp.ne.s32.totalorder %s406_s1, %s535_s29  ;;  %p541_p2 = scmp.lt.s32.totalorder %s535_s29, %s535_s29 }
  0x16   :  { %488 = vmatpush3.bf16.msra.mxu0 %v527_v11 }
  0x17   :  { %489 = vmatprep.subr.bf16.mxu0 %v559_v1  ;;  %p542_p3 = por %p541_p2, %p540_p1 }
  0x18   :  { %500 = vmatpush3.bf16.msra.mxu1 %v531_v29 }
  0x19   :  { %501 = vmatprep.subr.bf16.mxu1 %v559_v1  ;;  %p543_p4 = pnand %p542_p3, %p536_p0 }
  0x1a   :  { %490 = vmatpush3.bf16.msra.mxu0 %v528_v12 }
  0x1b   :  { %491 = vmatprep.subr.bf16.mxu0 %v559_v1 }
  0x1c   :  { %502 = vmatpush3.bf16.msra.mxu1 %v532_v30 }
  0x1d   :  { %507 = vmatprep.subr.bf16.mxu1 %v559_v1 }
  0x1e   :  { %492 = vmatpush3.bf16.msra.mxu0 %v213_v14 }
  0xe4   :  { %v87_v16 = vpop.f32.mrb[0].mxu0 }
  0xe5   :  { %v159_v17 = vpop.f32.mrb[0].mxu1  ;;  %v471_v19 = vpop.f32.mrb[1].mxu0 }
  0xe6   :  { %v165_v20 = vmax.f32 %v87_v16, %v159_v17  ;;  %v483_v21 = vpop.f32.mrb[1].mxu1  ;;  %v90_v22 = vpop.f32.mrb[2].mxu0 }
  0xe7   :  { %v162_v23 = vpop.f32.mrb[2].mxu1  ;;  %v472_v24 = vpop.f32.mrb[3].mxu0 }
  0xe8   :  { %v171_v25 = vadd.f32 %v423_v18, %v165_v20  ;;  %v484_v26 = vpop.f32.mrb[3].mxu1 }
  0xea   :  { %v172_v27 = vmax.f32 %v171_v25, 0.0 }
  0xec   :  { %v173_v28 = vpack.c.bf16 %v172_v27, %v172_v27 }
  0xee   :  { %494 = vmatmul.mubr.msk.bf16.vlgmr.msra.gmra.mrb[4].mxu0 %vm207_vm3, %v173_v28 }
 0x1c1   :  { %v249_v32 = vpop.f32.mrb[4].mxu0 }
 0x1c2   :  { %v250_v33 = vadd.f32 %v424_v31, %v249_v32  ;;  %v495_v34 = vpop.f32.mrb[5].mxu0 }
 0x1c3   :  { %v252_v35 = vpop.f32.mrb[6].mxu0 }
 0x1c4   :  { %v255_v36 = vmax.f32 %v250_v33, 0.0  ;;  %v496_v37 = vpop.f32.mrb[7].mxu0 }
 0x1c6   :  { %v256_v39 = vpack.c.bf16 %v255_v36, %v255_v36 }
 0x1c8   :  { %504 = vmatmul.mubr.msk.bf16.vlgmr.msra.gmra.mrb[4].mxu1 %vm286_vm4, %v256_v39 }
 0x1c9   :  { %508 = vmatpush3.bf16.msra.mxu1 %v533_v38  ;;  %511 = vmatprep.mubr.msk.bf16.mxu1 %vm560_vm0, %v559_v1 }
 0x1ca   :  { %509 = vmatprep.subr.bf16.mxu1 %v559_v1 }
 0x1cd   :  { %510 = vmatpush3.bf16.msra.mxu1 %v534_v40 }
 0x29b   :  { %v324_v42 = vpop.f32.mrb[4].mxu1 }
 0x29c   :  { %v325_v43 = vadd.f32 %v430_v41, %v324_v42  ;;  %v505_v44 = vpop.f32.mrb[5].mxu1 }
 0x29d   :  { %v327_v45 = vpop.f32.mrb[6].mxu1 }
 0x29e   :  { %v330_v46 = vmax.f32 %v325_v43, 0.0  ;;  %v506_v47 = vpop.f32.mrb[7].mxu1 }
 0x2a0   :  { %v331_v48 = vpack.c.bf16 %v330_v46, %v330_v46 }
 0x2a2   :  { %512 = vmatmul.mubr.msk.bf16.vlgmr.msra.gmra.mrb[8].mxu1 %vm353_vm5, %v331_v48 }
 0x375   :  { %v391_v50 = vpop.f32.mrb[8].mxu1 }
 0x376   :  { %v392_v51 = vadd.f32 %v435_v49, %v391_v50  ;;  %v513_v52 = vpop.f32.mrb[9].mxu1 }
 0x377   :  { %v394_v53 = vpop.f32.mrb[10].mxu1 }
 0x378   :  { %v514_v54 = vpop.f32.mrb[11].mxu1  ;;  %398 = vst.msk [vmem:[#allocation2] sm:$0x3] %vm397_vm6, %v392_v51 }
 0x379   :  { %546 = shalt.err (!%p543_p4)
}
 0x37a   :  { %s547_s2 = scalar_lea.hbm %s690_s3, 32 }
 0x37b   :  { %p548_p5 = scmp.ne.s32.totalorder %s690_s3, %s547_s2  ;;  %p551_p6 = scmp.lt.u32.totalorder %s547_s2, %s690_s3 }
 0x37d   :  { %p553_p7 = pnand %p551_p6, %p548_p5 }
 0x37f   :  { %556 = shalt.err (!%p553_p7)
}
 0x380   :  { %408 = dma.vmem_to_hbm [thread:$0]  %s406_s1, 32, %s690_s3, [#allocation3]  }
 0x381   :  { %557 = dma.done.wait [#allocation3], 32  }
 0x382   :  { %558 = vsyncadd [#allocation3], 4294967264 }
 0x383   :  { %412 = vsyncpa [#allocation3], 1 }

</bundles_post_ra>
